<compile_context>
chip_gen: v6e
topology: v6e:2x2x1
jax: 0.10.0
libtpu: 0.0.40
codegen_flags: <defaults>
</compile_context>

<pallas_src>
import functools

import jax
import jax.numpy as jnp
from jax.experimental import pallas as pl
from jax.experimental.pallas import tpu as pltpu


def _round_up(x, m):
    return ((x + m - 1) // m) * m


def _linear_single_kernel(x_ref, w_ref, b_ref, o_ref):
    """Whole problem in one VMEM block: fused matmul + bias, no reduction loop."""
    o_ref[...] = (
        jnp.dot(x_ref[...], w_ref[...], preferred_element_type=jnp.float32)
        + b_ref[...]
    ).astype(o_ref.dtype)


def _linear_tiled_kernel(x_ref, w_ref, b_ref, o_ref):
    """One (tm, tn) output tile; K-reduction runs along grid axis 2.

    o_ref is float32 and its block index is constant in k, so it stays
    resident in VMEM across the reduction and doubles as the accumulator.
    The bias is folded into the k==0 initialization (no finalize pass).
    """
    @pl.when(pl.program_id(2) == 0)
    def _():
        o_ref[...] = jnp.broadcast_to(b_ref[...], o_ref.shape).astype(o_ref.dtype)

    o_ref[...] += jnp.dot(
        x_ref[...], w_ref[...], preferred_element_type=jnp.float32
    )


@functools.partial(jax.jit, static_argnames=("tm", "tn", "tk"))
def mlp_1_forward(x, W, b, *, tm=512, tn=512, tk=512):
    B, K = x.shape
    Kw, N = W.shape
    assert K == Kw and b.shape == (N,)

    x = x.astype(jnp.float32)
    W = W.astype(jnp.float32)
    b2 = b.astype(jnp.float32).reshape(1, N)

    # ---- Fast path: everything fits in a single VMEM block (this is the
    # module's production B=8, K=32, N=8 shape). No padding, no grid, no
    # accumulator; the sub-128-lane store is masked but far cheaper than the
    # extra pad / slice launches it replaces.
    footprint_bytes = 4 * (B * K + K * N + B * N + N)
    if B <= tm and N <= tn and K <= tk and footprint_bytes <= (4 << 20):
        return pl.pallas_call(
            _linear_single_kernel,
            out_shape=jax.ShapeDtypeStruct((B, N), jnp.float32),
        )(x, W, b2)

    # ---- General path: canonical 3-axis tiled matmul.
    # Clamp tiles to (8, 128)-aligned problem extents so full blocks stay
    # sublane/lane dense; trailing partial blocks along B/N are handled by
    # pl.cdiv grids (out-of-bounds rows/cols are discarded on writeback).
    tm = min(tm, _round_up(B, 8))
    tn = min(tn, _round_up(N, 128))
    tk = min(tk, _round_up(K, 128))

    # Only K is explicitly zero-padded (both operands) so the reduction over
    # padded k-blocks is exact; B and N are NOT padded.
    Kp = _round_up(K, tk)
    if Kp != K:
        x = jnp.zeros((B, Kp), jnp.float32).at[:, :K].set(x)
        W = jnp.zeros((Kp, N), jnp.float32).at[:K, :].set(W)

    grid = (pl.cdiv(B, tm), pl.cdiv(N, tn), Kp // tk)

    return pl.pallas_call(
        _linear_tiled_kernel,
        out_shape=jax.ShapeDtypeStruct((B, N), jnp.float32),
        grid=grid,
        in_specs=[
            pl.BlockSpec((tm, tk), lambda i, j, k: (i, k)),
            pl.BlockSpec((tk, tn), lambda i, j, k: (k, j)),
            pl.BlockSpec((1, tn), lambda i, j, k: (0, j)),
        ],
        out_specs=pl.BlockSpec((tm, tn), lambda i, j, k: (i, j)),
        compiler_params=pltpu.CompilerParams(
            dimension_semantics=("parallel", "parallel", "arbitrary"),
            vmem_limit_bytes=32 * 1024 * 1024,
        ),
    )(x, W, b2)


if __name__ == "__main__":
    # Shapes implied by the module: in_dim = r * 2 * M, out = num_classes.
    r, M, num_classes, batch = 4, 4, 8, 8
    in_dim = r * 2 * M  # 32

    key = jax.random.PRNGKey(0)
    kx, kw, kb = jax.random.split(key, 3)

    # trunc_normal_(mean=-0.1, std=0.1): torch's default cutoffs [-2, 2] are
    # ~+/-20 std away from the mean -> effectively an un-truncated normal.
    W = (-0.1 + 0.1 * jax.random.truncated_normal(
        kw, -19.0, 21.0, (in_dim, num_classes))).astype(jnp.float32)
    b = (-0.1 + 0.1 * jax.random.truncated_normal(
        kb, -19.0, 21.0, (num_classes,))).astype(jnp.float32)
    x = jax.random.normal(kx, (batch, in_dim), dtype=jnp.float32)

    # Production shape -> single-block fast path.
    out = jax.block_until_ready(mlp_1_forward(x, W, b))
    ref = x @ W + b
    assert out.shape == (batch, num_classes)
    assert jnp.allclose(out, ref, atol=1e-5, rtol=1e-5)

    # Also exercise the tiled K-reduction path on a small, non-aligned shape
    # (partial B/N blocks, zero-padded K, 2 reduction steps). Loose tolerance:
    # matmul precision / accumulation order may differ slightly from XLA's.
    kx2, kw2, kb2 = jax.random.split(jax.random.PRNGKey(1), 3)
    B2, K2, N2 = 20, 600, 200
    x2 = jax.random.normal(kx2, (B2, K2), dtype=jnp.float32)
    W2 = 0.05 * jax.random.normal(kw2, (K2, N2), dtype=jnp.float32)
    b2 = jax.random.normal(kb2, (N2,), dtype=jnp.float32)
    out2 = jax.block_until_ready(mlp_1_forward(x2, W2, b2))
    ref2 = x2 @ W2 + b2
    assert out2.shape == (B2, N2)
    assert jnp.allclose(out2, ref2, atol=2e-2, rtol=2e-2)

    print("KERNEL_OK")
</pallas_src>

<mosaic_0001>
module attributes {stable_mosaic.version = 11 : i64} {
  func.func @_linear_single_kernel(%arg0: memref<8x32xf32, #tpu.memory_space<vmem>>, %arg1: memref<32x8xf32, #tpu.memory_space<vmem>>, %arg2: memref<1x8xf32, #tpu.memory_space<vmem>>, %arg3: memref<8x8xf32, #tpu.memory_space<vmem>>) attributes {dimension_semantics = [], scalar_prefetch = 0 : i64, scratch_operands = 0 : i64, tpu.core_type = #tpu.core_type<tc>} {
    %c0 = arith.constant 0 : index
    %c0_0 = arith.constant 0 : index
    %0 = vector.load %arg0[%c0, %c0_0] : memref<8x32xf32, #tpu.memory_space<vmem>>, vector<8x32xf32>
    %c0_1 = arith.constant 0 : index
    %c0_2 = arith.constant 0 : index
    %1 = vector.load %arg1[%c0_1, %c0_2] : memref<32x8xf32, #tpu.memory_space<vmem>>, vector<32x8xf32>
    %cst = arith.constant dense<0.000000e+00> : vector<8x8xf32>
    %2 = tpu.matmul %0, %1, %cst {dimension_numbers = #tpu.dot_dimension_numbers<[1], [0], [0], [1], [0, 0, 1, 1], [], []>} : vector<8x32xf32>, vector<32x8xf32>, vector<8x8xf32> -> vector<8x8xf32>
    %c0_3 = arith.constant 0 : index
    %c0_4 = arith.constant 0 : index
    %3 = vector.load %arg2[%c0_3, %c0_4] : memref<1x8xf32, #tpu.memory_space<vmem>>, vector<1x8xf32>
    %4 = vector.broadcast %3 : vector<1x8xf32> to vector<8x8xf32>
    %5 = arith.addf %2, %4 : vector<8x8xf32>
    %c0_5 = arith.constant 0 : index
    %c0_6 = arith.constant 0 : index
    %6 = vector.load %arg3[%c0_5, %c0_6] : memref<8x8xf32, #tpu.memory_space<vmem>>, vector<8x8xf32>
    tpu.vector_store %arg3[%c0_5, %c0_6], %5 {strides = array<i32>} : memref<8x8xf32, #tpu.memory_space<vmem>>, vector<8x8xf32>,
    return
  }
}

</mosaic_0001>

<bundles_post_ra>
// kernel: mlp_1_forward.1
= control target key start
LH: loop header
LB: loop body
LE: loop exit
PB: predicated region body
PF: predicated region fallthrough
CT: control target
= control target key end

     0   :  { %v160_v1 = vmov 0.0   ;;  %vm161_vm0 = vmmov 0   ;;  %s204_s0 = inlined_call_operand.vmem [shape: f32[8,32], index: 0, kind: input, shape index: {}]   ;;  %s205_s1 = inlined_call_operand.vmem [shape: f32[32,8], index: 1, kind: input, shape index: {}]   ;;  %s206_s2 = inlined_call_operand.vmem [shape: f32[1,8], index: 2, kind: input, shape index: {}]   ;;  %s207_s3 = inlined_call_operand.hbm [shape: f32[8,8], index: 3, kind: output, shape index: {}]  }
   0x1   :  { %v19_v0 = vld [vmem:[%s205_s1 + $0x18] sm:$0xff]  ;;  %124 = vmatprep.subr.mxu0 %v160_v1  ;;  %v18_v2 = vld [vmem:[%s205_s1 + $0x10] sm:$0xff]  ;;  %132 = vmatprep.mubr.msk.f32.mxu0 %vm161_vm0, %v160_v1 }
   0x2   :  { %125 = vmatpush3.msra.mxu0 %v19_v0 }
   0x3   :  { %8 = vsyncpa [#allocation3], 0  ;;  %126 = vmatprep.subr.mxu0 %v160_v1  ;;  %v17_v3 = vld [vmem:[%s205_s1 + $0x8] sm:$0xff]  ;;  %v16_v4 = vld [vmem:[%s205_s1] sm:$0xff]  ;;  %vm27_vm1 = vcmask 261120   ;;  %s162_s24 = smov [#allocation2]  }
   0x4   :  { %127 = vmatpush3.msra.mxu0 %v18_v2  ;;  %v15_v5 = vld [vmem:[%s204_s0] sm:$0xff]  ;;  %s109_s25 = sshll.u32 %s162_s24, 4  ;;  %vm101_vm2 = vcmask 64512   ;;  %s110_s25 = int_to_ptr.vmem [resolvable:$true] %s109_s25 }
   0x5   :  { %128 = vmatprep.subr.mxu0 %v160_v1  ;;  %v117_v6 = vld [vmem:[%s206_s2] ss:$0 sm:$0xff]  ;;  %s138_s1 = scalar_lea.vmem %s110_s25, 128  ;;  %p143_p1 = scmp.lt.s32.totalorder %s110_s25, %s110_s25 }
   0x6   :  { %129 = vmatpush3.msra.mxu0 %v17_v3  ;;  %p139_p0 = scmp.ne.s32.totalorder %s110_s25, %s138_s1  ;;  %p144_p2 = scmp.lt.s32.totalorder %s138_s1, %s138_s1 }
   0x7   :  { %130 = vmatprep.subr.mxu0 %v160_v1 }
   0x8   :  { %131 = vmatpush3.msra.mxu0 %v16_v4  ;;  %p145_p3 = por %p144_p2, %p143_p1 }
   0x9   :  { %133 = vmatmul.mubr.msk.f32.vlgmr.msra.gmra.mxu0 %vm27_vm1, %v15_v5 }
   0xa   :  { %p146_p4 = pnand %p145_p3, %p139_p0 }
  0xc9   :  { %v97_v7 = vpop.f32.mrf.mxu0 }
  0xca   :  { %v98_v8 = vadd.f32 %v117_v6, %v97_v7 }
  0xcb   :  { %v134_v9 = vpop.f32.mrf.mxu0 }
  0xcc   :  { %102 = vst.msk [vmem:[#allocation2] sm:$0xff] %vm101_vm2, %v98_v8 }
  0xcd   :  { %149 = shalt.err (!%p146_p4)
}
  0xce   :  { %112 = dma.vmem_to_hbm [thread:$0]  %s110_s25, 128, %s207_s3, [#allocation3]  }
  0xcf   :  { %158 = dma.done.wait [#allocation3], 128  }
  0xd0   :  { %159 = vsyncadd [#allocation3], 4294967168 }
  0xd1   :  { %116 = vsyncpa [#allocation3], 1 }

</bundles_post_ra>
